<compile_context>
chip_gen: v5e
topology: v5e:2x2
jax: 0.10.0
libtpu: 0.0.40
codegen_flags: <defaults>
</compile_context>

<pallas_src>
import math
import jax
import jax.numpy as jnp
from jax.experimental import pallas as pl
from jax.experimental.pallas import tpu as pltpu


def lj_kernel(feat_ref, c12_ref, c6_ref, out_ref):
    """One (TF, TN) tile of transposed distances.

    feat_ref : (TF, TN)  distances; batch on lanes, features on sublanes
    c12_ref  : (TF, 1)   c12 column (broadcast across lanes)
    c6_ref   : (TF, 1)   c6 column
    out_ref  : (1, TN)   lane-dense per-example energy row, accumulated over
                         the feature grid axis (grid axis 1, "arbitrary").
    """
    k = pl.program_id(1)

    @pl.when(k == 0)
    def _():
        out_ref[...] = jnp.zeros_like(out_ref)

    r = feat_ref[...].astype(jnp.float32)
    r2 = r * r
    inv_r2 = pl.reciprocal(r2)            # exact (1e-5 tolerance); single divide
    inv_r6 = inv_r2 * inv_r2 * inv_r2
    inv_r12 = inv_r6 * inv_r6
    e = c12_ref[...] * inv_r12 - c6_ref[...] * inv_r6   # (TF, TN)
    out_ref[...] += jnp.sum(e, axis=0, keepdims=True)   # sublane reduce -> (1, TN)


def lj_prior_pallas(in_feat, lj_parameters, *, tn=1024, tf=512):
    """in_feat: (N, F) distances; lj_parameters: (2, F) = [sqrt(c12); sqrt(c6)].

    Returns f32 energies of shape (N, 1).
    """
    n, f = in_feat.shape
    c12 = lj_parameters[0, :].astype(jnp.float32) ** 2
    c6 = lj_parameters[1, :].astype(jnp.float32) ** 2

    # Lane tile for the batch axis: multiple of 128.
    tn = max(128, (tn // 128) * 128)
    n_pad = pl.cdiv(n, tn) * tn

    # Sublane tile for the feature axis: multiple of 8 that divides the padded F.
    f_pad8 = max(8, pl.cdiv(f, 8) * 8)
    tf = min(max(8, (tf // 8) * 8), f_pad8)
    f_pad = pl.cdiv(f_pad8, tf) * tf

    # Transposed & padded distances (F_pad, N_pad).  Padding uses r = 1.0 so
    # values stay finite; padded features get zero parameters -> contribute 0,
    # padded batch columns are sliced off below.
    feat_t = jnp.ones((f_pad, n_pad), dtype=jnp.float32)
    feat_t = feat_t.at[:f, :n].set(in_feat.astype(jnp.float32).T)
    c12_col = jnp.zeros((f_pad, 1), jnp.float32).at[:f, 0].set(c12)
    c6_col = jnp.zeros((f_pad, 1), jnp.float32).at[:f, 0].set(c6)

    # Per-step VMEM: ~2 * tf * tn * 4 B (double-buffered distances) -> a few MiB,
    # comfortably inside the scoped VMEM default on v5e/v6e/v7x.
    out = pl.pallas_call(
        lj_kernel,
        out_shape=jax.ShapeDtypeStruct((1, n_pad), jnp.float32),
        grid=(n_pad // tn, f_pad // tf),
        in_specs=[
            pl.BlockSpec((tf, tn), lambda i, k: (k, i)),   # distances tile
            pl.BlockSpec((tf, 1), lambda i, k: (k, 0)),    # c12 column
            pl.BlockSpec((tf, 1), lambda i, k: (k, 0)),    # c6 column
        ],
        out_specs=pl.BlockSpec((1, tn), lambda i, k: (0, i)),  # lane-dense row
        compiler_params=pltpu.CompilerParams(
            dimension_semantics=("parallel", "arbitrary"),
        ),
    )(feat_t, c12_col, c6_col)

    # TODO(synk): distances ~0 still give inf/NaN (same as PyTorch original).
    return out[0, :n].reshape(n, 1)


def _reference(in_feat, lj_parameters):
    c12 = lj_parameters[0, :] ** 2
    c6 = lj_parameters[1, :] ** 2
    n = in_feat.shape[0]
    return jnp.sum(c12 / in_feat ** 12 - c6 / in_feat ** 6, axis=1).reshape(n, 1)


if __name__ == "__main__":
    root = jax.random.PRNGKey(0)
    k1, k2, k3 = jax.random.split(root, 3)

    # --- Test 1: small shapes matching the module example (N=16, F=8) ---
    num_interactions = 8
    n_examples = 16
    interaction_parameters = [
        {"c12": 0.5 + 0.1 * j, "c6": 0.2 + 0.05 * j} for j in range(num_interactions)
    ]
    lj_parameters = jnp.stack(
        [
            jnp.array([math.sqrt(p["c12"]) for p in interaction_parameters],
                      dtype=jnp.float32),
            jnp.array([math.sqrt(p["c6"]) for p in interaction_parameters],
                      dtype=jnp.float32),
        ],
        axis=0,
    )
    in_feat = 0.8 + 0.5 * jax.random.uniform(
        k1, (n_examples, num_interactions), dtype=jnp.float32
    )

    energy = jax.block_until_ready(lj_prior_pallas(in_feat, lj_parameters))
    ref = _reference(in_feat, lj_parameters)
    assert energy.shape == (n_examples, 1)
    assert jnp.allclose(energy, ref, rtol=1e-5, atol=1e-5)

    # --- Test 2: odd sizes exercising N/F padding and the 2-axis grid ---
    n2, f2 = 300, 20
    lj_params2 = 0.3 + jax.random.uniform(k2, (2, f2), dtype=jnp.float32)
    in_feat2 = 0.8 + 0.5 * jax.random.uniform(k3, (n2, f2), dtype=jnp.float32)
    energy2 = jax.block_until_ready(
        lj_prior_pallas(in_feat2, lj_params2, tn=256, tf=8)
    )
    ref2 = _reference(in_feat2, lj_params2)
    assert energy2.shape == (n2, 1)
    assert jnp.allclose(energy2, ref2, rtol=1e-5, atol=1e-5)

    print("KERNEL_OK")
</pallas_src>

<mosaic_0001>
module attributes {stable_mosaic.version = 11 : i64} {
  func.func @lj_kernel(%arg0: i32, %arg1: i32, %arg2: memref<8x1024xf32, #tpu.memory_space<vmem>>, %arg3: memref<8x1xf32, #tpu.memory_space<vmem>>, %arg4: memref<8x1xf32, #tpu.memory_space<vmem>>, %arg5: memref<1x1024xf32, #tpu.memory_space<vmem>>) attributes {dimension_semantics = [#tpu.dimension_semantics<parallel>, #tpu.dimension_semantics<arbitrary>], iteration_bounds = array<i64: 1, 1>, scalar_prefetch = 0 : i64, scratch_operands = 0 : i64, tpu.core_type = #tpu.core_type<tc>, window_params = [{transform_indices = @transform_0, window_bounds = array<i64: 8, 1024>}, {transform_indices = @transform_1, window_bounds = array<i64: 8, 1>}, {transform_indices = @transform_2, window_bounds = array<i64: 8, 1>}, {transform_indices = @transform_3, window_bounds = array<i64: 1, 1024>}]} {
    %c0_i32 = arith.constant 0 : i32
    %0 = arith.cmpi eq, %arg1, %c0_i32 : i32
    %1 = arith.extui %0 : i1 to i32
    %c0_i32_0 = arith.constant 0 : i32
    %2 = arith.cmpi ne, %1, %c0_i32_0 : i32
    scf.if %2 {
      %cst_10 = arith.constant 0.000000e+00 : f32
      %21 = vector.broadcast %cst_10 : f32 to vector<1x1024xf32>
      %c0_11 = arith.constant 0 : index
      %c0_12 = arith.constant 0 : index
      %22 = vector.load %arg5[%c0_11, %c0_12] : memref<1x1024xf32, #tpu.memory_space<vmem>>, vector<1x1024xf32>
      tpu.vector_store %arg5[%c0_11, %c0_12], %21 {strides = array<i32>} : memref<1x1024xf32, #tpu.memory_space<vmem>>, vector<1x1024xf32>,
    } else {
    }
    %c0 = arith.constant 0 : index
    %c0_1 = arith.constant 0 : index
    %3 = vector.load %arg2[%c0, %c0_1] : memref<8x1024xf32, #tpu.memory_space<vmem>>, vector<8x1024xf32>
    %4 = arith.mulf %3, %3 : vector<8x1024xf32>
    %5 = tpu.reciprocal %4 : vector<8x1024xf32> -> vector<8x1024xf32>
    %6 = arith.mulf %5, %5 : vector<8x1024xf32>
    %7 = arith.mulf %6, %5 : vector<8x1024xf32>
    %8 = arith.mulf %7, %7 : vector<8x1024xf32>
    %c0_2 = arith.constant 0 : index
    %c0_3 = arith.constant 0 : index
    %9 = vector.load %arg3[%c0_2, %c0_3] : memref<8x1xf32, #tpu.memory_space<vmem>>, vector<8x1xf32>
    %10 = vector.broadcast %9 : vector<8x1xf32> to vector<8x1024xf32>
    %11 = arith.mulf %10, %8 : vector<8x1024xf32>
    %c0_4 = arith.constant 0 : index
    %c0_5 = arith.constant 0 : index
    %12 = vector.load %arg4[%c0_4, %c0_5] : memref<8x1xf32, #tpu.memory_space<vmem>>, vector<8x1xf32>
    %13 = vector.broadcast %12 : vector<8x1xf32> to vector<8x1024xf32>
    %14 = arith.mulf %13, %7 : vector<8x1024xf32>
    %15 = arith.subf %11, %14 : vector<8x1024xf32>
    %c0_6 = arith.constant 0 : index
    %c0_7 = arith.constant 0 : index
    %16 = vector.load %arg5[%c0_6, %c0_7] : memref<1x1024xf32, #tpu.memory_space<vmem>>, vector<1x1024xf32>
    %cst = arith.constant dense<0.000000e+00> : vector<1024xf32>
    %17 = vector.multi_reduction <add>, %15, %cst [0] : vector<8x1024xf32> to vector<1024xf32>
    %18 = vector.shape_cast %17 : vector<1024xf32> to vector<1x1024xf32>
    %19 = arith.addf %16, %18 : vector<1x1024xf32>
    %c0_8 = arith.constant 0 : index
    %c0_9 = arith.constant 0 : index
    %20 = vector.load %arg5[%c0_8, %c0_9] : memref<1x1024xf32, #tpu.memory_space<vmem>>, vector<1x1024xf32>
    tpu.vector_store %arg5[%c0_8, %c0_9], %19 {strides = array<i32>} : memref<1x1024xf32, #tpu.memory_space<vmem>>, vector<1x1024xf32>,
    return
  }
  func.func @transform_0(%arg0: i32, %arg1: i32) -> (i32, i32) {
    %c0_i32 = arith.constant 0 : i32
    return %arg1, %arg0 : i32, i32
  }
  func.func @transform_1(%arg0: i32, %arg1: i32) -> (i32, i32) {
    %c0_i32 = arith.constant 0 : i32
    %c0_i32_0 = arith.constant 0 : i32
    return %arg1, %c0_i32 : i32, i32
  }
  func.func @transform_2(%arg0: i32, %arg1: i32) -> (i32, i32) {
    %c0_i32 = arith.constant 0 : i32
    %c0_i32_0 = arith.constant 0 : i32
    return %arg1, %c0_i32 : i32, i32
  }
  func.func @transform_3(%arg0: i32, %arg1: i32) -> (i32, i32) {
    %c0_i32 = arith.constant 0 : i32
    %c0_i32_0 = arith.constant 0 : i32
    return %c0_i32, %arg0 : i32, i32
  }
}

</mosaic_0001>

<bundles_post_ra>
// kernel: tpu_custom_call.1
= control target key start
LH: loop header
LB: loop body
LE: loop exit
PB: predicated region body
PF: predicated region fallthrough
CT: control target
= control target key end

     0   :  { %8 = vsyncpa [#allocation3], 0  ;;  %s652_s0 = inlined_call_operand.hbm [shape: f32[8,1024], index: 0, kind: input, shape index: {}]   ;;  %s653_s1 = inlined_call_operand.vmem [shape: f32[8,1], index: 1, kind: input, shape index: {}]   ;;  %s654_s2 = inlined_call_operand.vmem [shape: f32[8,1], index: 2, kind: input, shape index: {}]   ;;  %s655_s3 = inlined_call_operand.hbm [shape: f32[1,1024], index: 3, kind: output, shape index: {}]  }
   0x1   :  { %9 = vsyncpa [#allocation4], 0  ;;  %s15_s14 = sshll.u32 %s652_s0, 4  ;;  %s393_s15 = smov [#allocation2]   ;;  %s16_s14 = int_to_ptr.hbm [resolvable:$true] %s15_s14 }
   0x2   :  { %s17_s16 = sshll.u32 %s393_s15, 4  ;;  %s18_s16 = int_to_ptr.vmem [resolvable:$true] %s17_s16 }
   0x3   :  { %20 = dma.hbm_to_vmem [thread:$0]  %s16_s14, 1024, %s18_s16, [#allocation3]  }
   0x4   :  { %389 = dma.done.wait [#allocation3], 1024  }
   0x5   :  { %390 = vsyncadd [#allocation3], 4294966272  ;;  %v394_v0 = vmov 0   ;;  %v186_v1 = vld [vmem:[%s653_s1] sm:$0xff]  ;;  %v35_v4 = vld [vmem:[#allocation2 + $0x8] sm:$0xff]  ;;  %s395_s0 = smov [#allocation5]  }
   0x6   :  { %324 = vset.pattern.permute.xlu0 %v394_v0  ;;  %v200_v2 = vld [vmem:[%s654_s2] sm:$0xff]  ;;  %v427_v6 = vmul.f32 %v35_v4, %v35_v4  ;;  %v36_v7 = vld [vmem:[#allocation2 + $0x10] sm:$0xff]  ;;  %v37_v8 = vld [vmem:[#allocation2 + $0x18] sm:$0xff]  ;;  %v664_v4 = vmov 0  ;;  %s308_s1 = sshll.u32 %s395_s0, 4  ;;  %s310_s22 = sshll.u32 %s655_s3, 4  ;;  %s309_s1 = int_to_ptr.vmem [resolvable:$true] %s308_s1  ;;  %s311_s22 = int_to_ptr.hbm [resolvable:$true] %s310_s22 }
   0x7   :  { %189 = vperm.xlu0 %324, %v186_v1   ;;  %v34_v3 = vld [vmem:[#allocation2] sm:$0xff]  ;;  %v431_v9 = vmul.f32 %v36_v7, %v36_v7  ;;  %v39_v11 = vld [vmem:[#allocation2 + $0x28] sm:$0xff]  ;;  %v433_v12 = vmul.f32 %v37_v8, %v37_v8  ;;  %v40_v14 = vld [vmem:[#allocation2 + $0x30] sm:$0xff] }
   0x8   :  { %v425_v5 = vmul.f32 %v34_v3, %v34_v3  ;;  %v38_v10 = vld [vmem:[#allocation2 + $0x20] sm:$0xff]  ;;  %v41_v16 = vld [vmem:[#allocation2 + $0x38] sm:$0xff]  ;;  %v442_v18 = vmul.f32 %v39_v11, %v39_v11  ;;  %v444_v19 = vmul.f32 %v40_v14, %v40_v14  ;;  %vm69_vm2 = vweird.f32 %v427_v6 }
   0x9   :  { %v439_v17 = vmul.f32 %v38_v10, %v38_v10  ;;  %v449_v21 = vmul.f32 %v41_v16, %v41_v16  ;;  %v75_v41 = vand.u32 2147483648, %v427_v6  ;;  %v89_v49 = vand.u32 2147483648, %v431_v9 }
   0xa   :  { %325 = vrcp.f32 %v425_v5  ;;  %vm55_vm0 = vweird.f32 %v425_v5  ;;  %v61_v37 = vand.u32 2147483648, %v425_v5  ;;  %v59_v47 = vand.u32 2147483647, %v425_v5 }
   0xb   :  { %327 = vrcp.f32 %v427_v6  ;;  %v73_v52 = vand.u32 2147483647, %v427_v6  ;;  %v517_v55 = vor.u32 1.1754944e-38, %v75_v41  ;;  %v87_v56 = vand.u32 2147483647, %v431_v9 }
   0xc   :  { %329 = vrcp.f32 %v431_v9  ;;  %v510_v51 = vor.u32 1.1754944e-38, %v61_v37  ;;  %vm83_vm6 = vweird.f32 %v431_v9  ;;  %v90_v62 = vor.u32 1.1754944e-38, %v89_v49 }
   0xd   :  { %331 = vrcp.f32 %v433_v12  ;;  %vm97_vm8 = vweird.f32 %v433_v12  ;;  %v101_v63 = vand.u32 2147483647, %v433_v12  ;;  %v103_v0 = vand.u32 2147483648, %v433_v12 }
   0xe   :  { %333 = vrcp.f32 %v439_v17  ;;  %vm529_vm10 = vcmp.eq.f32.partialorder %v59_v47, 8.507059e+37  ;;  %vm533_vm11 = vcmp.eq.f32.partialorder %v73_v52, 8.507059e+37  ;;  %vm537_vm12 = vcmp.eq.f32.partialorder %v87_v56, 8.507059e+37 }
   0xf   :  { %203 = vperm.xlu0 %324, %v200_v2   ;;  %335 = vrcp.f32 %v442_v18  ;;  %v665_v4 = vsel %vm537_vm12, 4294967295, %v664_v4  ;;  %vm111_vm13 = vweird.f32 %v439_v17  ;;  %vm125_vm15 = vweird.f32 %v442_v18 }
  0x10   :  { %v435_v13 = vpop.eup %325  ;;  %337 = vrcp.f32 %v444_v19  ;;  %v117_v14 = vand.u32 2147483648, %v439_v17  ;;  %v157_v37 = vand.u32 2147483647, %v449_v21  ;;  %v104_v41 = vor.u32 1.1754944e-38, %v103_v0 }
  0x11   :  { %v437_v15 = vpop.eup %327  ;;  %v51_v20 = vmul.f32 %v435_v13, %v425_v5  ;;  %339 = vrcp.f32 %v449_v21  ;;  %vm56_vm1 = vweird.f32 %v435_v13 }
  0x12   :  { %v65_v22 = vmul.f32 %v437_v15, %v427_v6  ;;  %v455_v23 = vpop.eup %329  ;;  %vm70_vm3 = vweird.f32 %v437_v15  ;;  %vm485_vm4 = vmor %vm55_vm0, %vm56_vm1 }
  0x13   :  { %v52_v24 = vsub.f32 1.0, %v51_v20  ;;  %v459_v26 = vpop.eup %331  ;;  %v79_v27 = vmul.f32 %v455_v23, %v431_v9  ;;  %vm493_vm5 = vmor %vm69_vm2, %vm70_vm3  ;;  %vm84_vm7 = vweird.f32 %v455_v23  ;;  %v115_v9 = vand.u32 2147483647, %v439_v17 }
  0x14   :  { %v66_v25 = vsub.f32 1.0, %v65_v22  ;;  %v463_v28 = vpop.eup %333  ;;  %v93_v32 = vmul.f32 %v459_v26, %v433_v12  ;;  %vm98_vm9 = vweird.f32 %v459_v26  ;;  %vm547_vm0 = vmor %vm83_vm6, %vm84_vm7  ;;  %vm139_vm3 = vweird.f32 %v444_v19 }
  0x15   :  { %v53_v29 = vmul.f32 %v435_v13, %v52_v24  ;;  %v466_v30 = vpop.eup %335  ;;  %v80_v35 = vsub.f32 1.0, %v79_v27  ;;  %v107_v38 = vmul.f32 %v463_v28, %v439_v17  ;;  %vm112_vm14 = vweird.f32 %v463_v28  ;;  %vm559_vm2 = vmor %vm97_vm8, %vm98_vm9 }
  0x16   :  { %v67_v31 = vmul.f32 %v437_v15, %v66_v25  ;;  %v471_v33 = vpop.eup %337  ;;  %v94_v42 = vsub.f32 1.0, %v93_v32  ;;  %v121_v44 = vmul.f32 %v466_v30, %v442_v18  ;;  %vm126_vm1 = vweird.f32 %v466_v30  ;;  %vm568_vm7 = vmor %vm111_vm13, %vm112_vm14 }
  0x17   :  { %v475_v34 = vpop.eup %339  ;;  %v480_v36 = vadd.f32 %v435_v13, %v53_v29  ;;  %v135_v45 = vmul.f32 %v471_v33, %v444_v19  ;;  %v81_v48 = vmul.f32 %v455_v23, %v80_v35  ;;  %v108_v53 = vsub.f32 1.0, %v107_v38  ;;  %vm577_vm12 = vmor %vm125_vm15, %vm126_vm1 }
  0x18   :  { %v490_v40 = vadd.f32 %v437_v15, %v67_v31  ;;  %v149_v46 = vmul.f32 %v475_v34, %v449_v21  ;;  %v95_v57 = vmul.f32 %v459_v26, %v94_v42  ;;  %v122_v58 = vsub.f32 1.0, %v121_v44 }
  0x19   :  { %v58_v50 = vsel %vm485_vm4, %v435_v13, %v480_v36  ;;  %v136_v59 = vsub.f32 1.0, %v135_v45  ;;  %v82_v61 = vadd.f32 %v455_v23, %v81_v48  ;;  %v109_v1 = vmul.f32 %v463_v28, %v108_v53 }
  0x1a   :  { %v72_v54 = vsel %vm493_vm5, %v437_v15, %v490_v40  ;;  %v150_v60 = vsub.f32 1.0, %v149_v46  ;;  %v96_v5 = vadd.f32 %v459_v26, %v95_v57  ;;  %v123_v7 = vmul.f32 %v466_v30, %v122_v58 }
  0x1b   :  { %v137_v8 = vmul.f32 %v471_v33, %v136_v59  ;;  %vm140_vm6 = vweird.f32 %v471_v33  ;;  %v110_v16 = vadd.f32 %v463_v28, %v109_v1  ;;  %v129_v12 = vand.u32 2147483647, %v442_v18 }
  0x1c   :  { %v151_v10 = vmul.f32 %v475_v34, %v150_v60  ;;  %vm153_vm8 = vweird.f32 %v449_v21  ;;  %vm154_vm9 = vweird.f32 %v475_v34  ;;  %v131_v22 = vand.u32 2147483648, %v442_v18  ;;  %vm587_vm13 = vmor %vm139_vm3, %vm140_vm6 }
  0x1d   :  { %v143_v24 = vand.u32 2147483647, %v444_v19  ;;  %v145_v25 = vand.u32 2147483648, %v444_v19  ;;  %v159_v27 = vand.u32 2147483648, %v449_v21  ;;  %v124_v29 = vadd.f32 %v466_v30, %v123_v7  ;;  %vm607_vm15 = vmor %vm153_vm8, %vm154_vm9 }
  0x1e   :  { %v138_v31 = vadd.f32 %v471_v33, %v137_v8  ;;  %v152_v35 = vadd.f32 %v475_v34, %v151_v10  ;;  %v86_v18 = vsel %vm547_vm0, %v455_v23, %v82_v61  ;;  %v100_v19 = vsel %vm559_vm2, %v459_v26, %v96_v5 }
  0x1f   :  { %vm599_vm14 = vcmp.eq.f32.partialorder %v101_v63, 8.507059e+37  ;;  %v114_v23 = vsel %vm568_vm7, %v463_v28, %v110_v16  ;;  %vm116_vm0 = vcmp.eq.f32.partialorder %v115_v9, 8.507059e+37  ;;  %v118_v44 = vor.u32 1.1754944e-38, %v117_v14 }
  0x20   :  { %vm130_vm1 = vcmp.eq.f32.partialorder %v129_v12, 8.507059e+37  ;;  %v132_v26 = vor.u32 1.1754944e-38, %v131_v22  ;;  %vm144_vm2 = vcmp.eq.f32.partialorder %v143_v24, 8.507059e+37  ;;  %v146_v45 = vor.u32 1.1754944e-38, %v145_v25 }
  0x21   :  { %v160_v46 = vor.u32 1.1754944e-38, %v159_v27  ;;  %v128_v47 = vsel %vm577_vm12, %v466_v30, %v124_v29  ;;  %v142_v21 = vsel %vm587_vm13, %v471_v33, %v138_v31  ;;  %v156_v48 = vsel %vm607_vm15, %v475_v34, %v152_v35 }
  0x22   :  { %vm158_vm3 = vcmp.eq.f32.partialorder %v157_v37, 8.507059e+37  ;;  %v63_v28 = vsel %vm529_vm10, %v510_v51, %v58_v50  ;;  %v77_v30 = vsel %vm533_vm11, %v517_v55, %v72_v54  ;;  %vm680_vm12 = vnez %v665_v4 }
  0x23   :  { %v91_v33 = vsel %vm680_vm12, %v90_v62, %v86_v18  ;;  %v105_v34 = vsel %vm599_vm14, %v104_v41, %v100_v19  ;;  %v119_v13 = vsel %vm116_vm0, %v118_v44, %v114_v23  ;;  %v133_v36 = vsel %vm130_vm1, %v132_v26, %v128_v47 }
  0x24   :  { %v147_v39 = vsel %vm144_vm2, %v146_v45, %v142_v21  ;;  %v161_v49 = vsel %vm158_vm3, %v160_v46, %v156_v48  ;;  %v162_v50 = vmul.f32 %v63_v28, %v63_v28  ;;  %v163_v51 = vmul.f32 %v77_v30, %v77_v30 }
  0x25   :  { %v164_v43 = vmul.f32 %v91_v33, %v91_v33  ;;  %v165_v52 = vmul.f32 %v105_v34, %v105_v34  ;;  %v166_v53 = vmul.f32 %v119_v13, %v119_v13  ;;  %v167_v15 = vmul.f32 %v133_v36, %v133_v36 }
  0x26   :  { %v168_v40 = vmul.f32 %v147_v39, %v147_v39  ;;  %v169_v56 = vmul.f32 %v161_v49, %v161_v49  ;;  %v170_v57 = vmul.f32 %v162_v50, %v63_v28  ;;  %v171_v54 = vmul.f32 %v163_v51, %v77_v30 }
  0x27   :  { %v172_v55 = vmul.f32 %v164_v43, %v91_v33  ;;  %v173_v58 = vmul.f32 %v165_v52, %v105_v34  ;;  %v174_v60 = vmul.f32 %v166_v53, %v119_v13  ;;  %v175_v61 = vmul.f32 %v167_v15, %v133_v36 }
  0x28   :  { %v176_v62 = vmul.f32 %v168_v40, %v147_v39  ;;  %v177_v63 = vmul.f32 %v169_v56, %v161_v49  ;;  %v178_v0 = vmul.f32 %v170_v57, %v170_v57  ;;  %v179_v1 = vmul.f32 %v171_v54, %v171_v54 }
  0x29   :  { %v180_v2 = vmul.f32 %v172_v55, %v172_v55  ;;  %v181_v3 = vmul.f32 %v173_v58, %v173_v58  ;;  %v182_v4 = vmul.f32 %v174_v60, %v174_v60  ;;  %v183_v5 = vmul.f32 %v175_v61, %v175_v61 }
  0x2a   :  { %v184_v6 = vmul.f32 %v176_v62, %v176_v62  ;;  %v185_v7 = vmul.f32 %v177_v63, %v177_v63  ;;  %vm286_vm4 = vcmask 1040384   ;;  %vm288_vm5 = vcmask 1042434  }
  0x2b   :  { %vm290_vm10 = vcmask 1041408   ;;  %vm292_vm11 = vcmask 1044484   ;;  %vm294_vm6 = vcmask 1046534   ;;  %vm296_vm7 = vcmask 1045508  }
  0x2c   :  { %vm298_vm8 = vcmask 1043456  }
  0x79   :  { %v190_v59 = vpop.permute.xlu0 %189 }
  0x7a   :  { %v192_v8 = vmul.f32 %v190_v59, %v178_v0  ;;  %v193_v10 = vmul.f32 %v190_v59, %v179_v1  ;;  %v194_v11 = vmul.f32 %v190_v59, %v180_v2  ;;  %v195_v9 = vmul.f32 %v190_v59, %v181_v3 }
  0x7b   :  { %v196_v16 = vmul.f32 %v190_v59, %v182_v4  ;;  %v197_v20 = vmul.f32 %v190_v59, %v183_v5  ;;  %v198_v12 = vmul.f32 %v190_v59, %v184_v6  ;;  %v199_v17 = vmul.f32 %v190_v59, %v185_v7 }
  0x81   :  { %v204_v14 = vpop.permute.xlu0 %203 }
  0x82   :  { %v206_v22 = vmul.f32 %v204_v14, %v170_v57  ;;  %v207_v24 = vmul.f32 %v204_v14, %v171_v54  ;;  %v208_v25 = vmul.f32 %v204_v14, %v172_v55  ;;  %v209_v27 = vmul.f32 %v204_v14, %v173_v58 }
  0x83   :  { %v210_v29 = vmul.f32 %v204_v14, %v174_v60  ;;  %v211_v31 = vmul.f32 %v204_v14, %v175_v61  ;;  %v212_v32 = vmul.f32 %v204_v14, %v176_v62  ;;  %v213_v35 = vmul.f32 %v204_v14, %v177_v63 }
  0x84   :  { %v214_v37 = vsub.f32 %v192_v8, %v206_v22  ;;  %v215_v18 = vsub.f32 %v193_v10, %v207_v24  ;;  %v216_v19 = vsub.f32 %v194_v11, %v208_v25  ;;  %v217_v38 = vsub.f32 %v195_v9, %v209_v27 }
  0x85   :  { %v218_v41 = vsub.f32 %v196_v16, %v210_v29  ;;  %v219_v42 = vsub.f32 %v197_v20, %v211_v31  ;;  %v220_v23 = vsub.f32 %v198_v12, %v212_v32  ;;  %v221_v44 = vsub.f32 %v199_v17, %v213_v35 }
  0x86   :  { %v223_v26 = vrot.slane %v214_v37, 4  ;;  %v229_v45 = vrot.slane %v215_v18, 4  ;;  %v235_v46 = vrot.slane %v216_v19, 4  ;;  %v241_v47 = vrot.slane %v217_v38, 4 }
  0x87   :  { %v247_v21 = vrot.slane %v218_v41, 4  ;;  %v253_v48 = vrot.slane %v219_v42, 4  ;;  %v259_v28 = vrot.slane %v220_v23, 4  ;;  %v265_v30 = vrot.slane %v221_v44, 4 }
  0x88   :  { %v224_v33 = vadd.f32 %v223_v26, %v214_v37  ;;  %v230_v34 = vadd.f32 %v229_v45, %v215_v18  ;;  %v236_v13 = vadd.f32 %v235_v46, %v216_v19  ;;  %v242_v36 = vadd.f32 %v241_v47, %v217_v38 }
  0x89   :  { %v248_v39 = vadd.f32 %v247_v21, %v218_v41  ;;  %v254_v49 = vadd.f32 %v253_v48, %v219_v42  ;;  %v260_v50 = vadd.f32 %v259_v28, %v220_v23  ;;  %v266_v51 = vadd.f32 %v265_v30, %v221_v44 }
  0x8a   :  { %v225_v43 = vrot.slane %v224_v33, 2  ;;  %v231_v52 = vrot.slane %v230_v34, 2  ;;  %v237_v53 = vrot.slane %v236_v13, 2  ;;  %v243_v15 = vrot.slane %v242_v36, 2 }
  0x8b   :  { %v249_v40 = vrot.slane %v248_v39, 2  ;;  %v255_v56 = vrot.slane %v254_v49, 2  ;;  %v261_v57 = vrot.slane %v260_v50, 2  ;;  %v267_v54 = vrot.slane %v266_v51, 2 }
  0x8c   :  { %v226_v55 = vadd.f32 %v225_v43, %v224_v33  ;;  %v232_v58 = vadd.f32 %v231_v52, %v230_v34  ;;  %v238_v59 = vadd.f32 %v237_v53, %v236_v13  ;;  %v244_v60 = vadd.f32 %v243_v15, %v242_v36 }
  0x8d   :  { %v250_v61 = vadd.f32 %v249_v40, %v248_v39  ;;  %v256_v62 = vadd.f32 %v255_v56, %v254_v49  ;;  %v262_v63 = vadd.f32 %v261_v57, %v260_v50  ;;  %v268_v0 = vadd.f32 %v267_v54, %v266_v51 }
  0x8e   :  { %v227_v1 = vrot.slane %v226_v55, 1  ;;  %v233_v2 = vrot.slane %v232_v58, 1  ;;  %v239_v3 = vrot.slane %v238_v59, 1  ;;  %v245_v4 = vrot.slane %v244_v60, 1 }
  0x8f   :  { %v251_v5 = vrot.slane %v250_v61, 1  ;;  %v257_v6 = vrot.slane %v256_v62, 1  ;;  %v263_v7 = vrot.slane %v262_v63, 1  ;;  %v269_v8 = vrot.slane %v268_v0, 1 }
  0x90   :  { %v234_v10 = vadd.f32 %v233_v2, %v232_v58  ;;  %v240_v11 = vadd.f32 %v239_v3, %v238_v59  ;;  %v246_v9 = vadd.f32 %v245_v4, %v244_v60  ;;  %v228_v17 = vadd.f32 %v227_v1, %v226_v55 }
  0x91   :  { %v252_v14 = vadd.f32 %v251_v5, %v250_v61  ;;  %v258_v16 = vadd.f32 %v257_v6, %v256_v62  ;;  %v264_v20 = vadd.f32 %v263_v7, %v262_v63  ;;  %v270_v12 = vadd.f32 %v269_v8, %v268_v0 }
  0x92   :  { %v279_v22 = vrot.slane %v234_v10, 7  ;;  %v280_v24 = vrot.slane %v240_v11, 6  ;;  %v281_v25 = vrot.slane %v246_v9, 5 }
  0x93   :  { %v282_v27 = vrot.slane %v252_v14, 4  ;;  %v283_v29 = vrot.slane %v258_v16, 3  ;;  %v284_v31 = vrot.slane %v264_v20, 2  ;;  %v285_v32 = vrot.slane %v270_v12, 1 }
  0x94   :  { %v287_v35 = vsel %vm286_vm4, %v228_v17, %v279_v22  ;;  %v289_v37 = vsel %vm288_vm5, %v280_v24, %v281_v25 }
  0x95   :  { %v291_v18 = vsel %vm290_vm10, %v287_v35, %v289_v37  ;;  %v293_v19 = vsel %vm292_vm11, %v282_v27, %v283_v29  ;;  %v295_v38 = vsel %vm294_vm6, %v284_v31, %v285_v32 }
  0x96   :  { %v297_v41 = vsel %vm296_vm7, %v293_v19, %v295_v38 }
  0x97   :  { %v299_v42 = vsel %vm298_vm8, %v291_v18, %v297_v41 }
  0x98   :  { %302 = vst [vmem:[#allocation5] sm:$0xff] %v299_v42 }
  0x99   :  { %313 = dma.vmem_to_hbm [thread:$0]  %s309_s1, 128, %s311_s22, [#allocation4]  }
  0x9a   :  { %391 = dma.done.wait [#allocation4], 128  }
  0x9b   :  { %392 = vsyncadd [#allocation4], 4294967168 }
  0x9c   :  { %318 = vsyncpa [#allocation3], 1 }
  0x9d   :  { %319 = vsyncpa [#allocation4], 1 }

</bundles_post_ra>
